<compile_context>
chip_gen: v6e
topology: v6e:2x2x1
jax: 0.10.0
libtpu: 0.0.40
codegen_flags: <defaults>
</compile_context>

<pallas_src>
import jax
import jax.numpy as jnp
from jax.experimental import pallas as pl
from jax.experimental.pallas import tpu as pltpu


_LANE = 128        # lane width: output/input last dim kept a multiple of this
_TM_CAP = 16384    # max lanes per tile (f32, double-buffered: ~8.2 MiB VMEM)


def conv1x1_kernel(x_ref, w_ref, b_ref, o_ref):
    """1x1 conv tile: full-tile vmul + sublane (XLU) reduction over Cin.

    x_ref: VMEM [Cin, TM]    (lane axis = TM = flattened spatial/batch tile)
    w_ref: VMEM [Cin, Cout]  (weight columns, broadcast along lanes)
    b_ref: SMEM [Cout]
    o_ref: VMEM [Cout, TM]
    """
    x = x_ref[...]                                  # [Cin, TM] f32
    cout = o_ref.shape[0]
    rows = []
    for co in range(cout):                          # Cout == 1 here -> no real loop
        w_col = w_ref[:, co:co + 1]                 # [Cin, 1], static lane slice
        acc = jnp.sum(x * w_col, axis=0, keepdims=True)   # VPU mul + XLU reduce
        rows.append(acc + b_ref[co])                # scalar bias from SMEM
    out = rows[0] if cout == 1 else jnp.concatenate(rows, axis=0)
    o_ref[...] = out.astype(o_ref.dtype)


def _pick_m_tile(hw, cap=_TM_CAP):
    """Largest multiple of 128 that divides hw and is <= cap, else None."""
    if hw % _LANE != 0:
        return None
    q = hw // _LANE
    best = None
    d = 1
    while d * d <= q:
        if q % d == 0:
            for cand in (d, q // d):
                t = cand * _LANE
                if t <= cap and (best is None or t > best):
                    best = t
        d += 1
    return best


def conv1x1_pallas(x_nchw, weight, bias):
    """Equivalent of nn.Conv2d(Cin, Cout, kernel_size=1) on an NCHW input.

    x_nchw: [B, Cin, H, W]    float32
    weight: [Cout, Cin, 1, 1] float32 (PyTorch layout)
    bias:   [Cout]            float32
    returns [B, Cout, H, W]   float32
    """
    B, Cin, H, W = x_nchw.shape
    Cout = weight.shape[0]
    HW = H * W

    w_cols = weight.reshape(Cout, Cin).T            # [Cin, Cout]  (VMEM operand)
    bias = bias.reshape(Cout)

    tm_a = _pick_m_tile(HW)
    fold_small = (B * HW) <= _TM_CAP                # small problems: one grid step

    if tm_a is not None and not fold_small:
        # ---- Large-image fast path: pure reshapes, grid over (batch, M tiles) ----
        x3d = x_nchw.reshape(B, Cin, HW)
        grid = (B, HW // tm_a)
        out3d = pl.pallas_call(
            conv1x1_kernel,
            out_shape=jax.ShapeDtypeStruct((B, Cout, HW), jnp.float32),
            grid=grid,
            in_specs=[
                pl.BlockSpec((None, Cin, tm_a), lambda b, m: (b, 0, m)),   # x tile
                pl.BlockSpec(memory_space=pltpu.MemorySpace.VMEM),         # weights
                pl.BlockSpec(memory_space=pltpu.MemorySpace.SMEM),         # bias
            ],
            out_specs=pl.BlockSpec((None, Cout, tm_a), lambda b, m: (b, 0, m)),
            compiler_params=pltpu.CompilerParams(
                dimension_semantics=("parallel", "parallel")),
        )(x3d, w_cols, bias)
        return out3d.reshape(B, Cout, H, W)

    # ---- Fold path: batch folded into the lane axis, padded to 128 lanes ----
    M = B * HW
    x2d = jnp.transpose(x_nchw.reshape(B, Cin, HW), (1, 0, 2)).reshape(Cin, M)
    Mp = ((M + _LANE - 1) // _LANE) * _LANE
    if Mp <= _TM_CAP:
        tm = Mp
    else:
        tm = _TM_CAP
        Mp = ((M + tm - 1) // tm) * tm
    if Mp != M:
        x2d = jnp.pad(x2d, ((0, 0), (0, Mp - M)))
    grid = (Mp // tm,)

    out2d = pl.pallas_call(
        conv1x1_kernel,
        out_shape=jax.ShapeDtypeStruct((Cout, Mp), jnp.float32),
        grid=grid,
        in_specs=[
            pl.BlockSpec((Cin, tm), lambda m: (0, m)),                 # x tile (VMEM)
            pl.BlockSpec(memory_space=pltpu.MemorySpace.VMEM),         # weights
            pl.BlockSpec(memory_space=pltpu.MemorySpace.SMEM),         # bias
        ],
        out_specs=pl.BlockSpec((Cout, tm), lambda m: (0, m)),
        compiler_params=pltpu.CompilerParams(
            dimension_semantics=("parallel",)),
    )(x2d, w_cols, bias)

    out = out2d[:, :M].reshape(Cout, B, HW)
    return jnp.transpose(out, (1, 0, 2)).reshape(B, Cout, H, W)


def my_model_forward(x, weight, bias):
    # MyModel.forward(x): out = conv1(x[0])
    return conv1x1_pallas(x[0], weight, bias)


if __name__ == "__main__":
    key = jax.random.PRNGKey(0)
    k_x, k_w, k_b = jax.random.split(key, 3)

    # x: stack of 2 NCHW tensors; x[0] feeds the Conv2d(16, 1, kernel_size=1).
    S, B, Cin, H, W = 2, 2, 16, 8, 8
    Cout = 1
    x = jax.random.normal(k_x, (S, B, Cin, H, W), dtype=jnp.float32)

    # Deterministic parameter init (synthetic, not a checkpoint load).
    bound = 1.0 / (Cin ** 0.5)
    weight = jax.random.uniform(k_w, (Cout, Cin, 1, 1), jnp.float32, -bound, bound)
    bias = jax.random.uniform(k_b, (Cout,), jnp.float32, -bound, bound)

    out = my_model_forward(x, weight, bias)
    out = jax.block_until_ready(out)

    # Reference check in plain JAX (einsum over channels == 1x1 conv).
    ref = jnp.einsum("bchw,oc->bohw", x[0], weight.reshape(Cout, Cin)) \
        + bias.reshape(1, Cout, 1, 1)
    assert out.shape == (B, Cout, H, W)
    assert jnp.allclose(out, ref, atol=1e-5, rtol=1e-5)

    print("KERNEL_OK")
</pallas_src>

<mosaic_0001>
module attributes {stable_mosaic.version = 11 : i64} {
  func.func @conv1x1_kernel(%arg0: i32, %arg1: memref<16x128xf32, #tpu.memory_space<vmem>>, %arg2: memref<16x1xf32, #tpu.memory_space<vmem>>, %arg3: memref<1xf32, #tpu.memory_space<smem>>, %arg4: memref<1x128xf32, #tpu.memory_space<vmem>>) attributes {dimension_semantics = [#tpu.dimension_semantics<parallel>], iteration_bounds = array<i64: 1>, scalar_prefetch = 0 : i64, scratch_operands = 0 : i64, tpu.core_type = #tpu.core_type<tc>, window_params = [{transform_indices = @transform_0, window_bounds = array<i64: 16, 128>}, {pipeline_mode = #tpu.pipeline_mode<synchronous>, transform_indices = @transform_1, window_bounds = array<i64: 16, 1>}, {transform_indices = @transform_2, window_bounds = array<i64: 1>}, {transform_indices = @transform_3, window_bounds = array<i64: 1, 128>}]} {
    %c0 = arith.constant 0 : index
    %c0_0 = arith.constant 0 : index
    %0 = vector.load %arg1[%c0, %c0_0] : memref<16x128xf32, #tpu.memory_space<vmem>>, vector<16x128xf32>
    %c0_1 = arith.constant 0 : index
    %c0_2 = arith.constant 0 : index
    %1 = vector.load %arg2[%c0_1, %c0_2] : memref<16x1xf32, #tpu.memory_space<vmem>>, vector<16x1xf32>
    %2 = vector.broadcast %1 : vector<16x1xf32> to vector<16x128xf32>
    %3 = arith.mulf %0, %2 : vector<16x128xf32>
    %cst = arith.constant dense<0.000000e+00> : vector<128xf32>
    %4 = vector.multi_reduction <add>, %3, %cst [0] : vector<16x128xf32> to vector<128xf32>
    %5 = vector.shape_cast %4 : vector<128xf32> to vector<1x128xf32>
    %c0_3 = arith.constant 0 : index
    %6 = memref.load %arg3[%c0_3] : memref<1xf32, #tpu.memory_space<smem>>
    %7 = vector.broadcast %6 : f32 to vector<1x128xf32>
    %8 = arith.addf %5, %7 : vector<1x128xf32>
    %c0_4 = arith.constant 0 : index
    %c0_5 = arith.constant 0 : index
    %9 = vector.load %arg4[%c0_4, %c0_5] : memref<1x128xf32, #tpu.memory_space<vmem>>, vector<1x128xf32>
    tpu.vector_store %arg4[%c0_4, %c0_5], %8 {strides = array<i32>} : memref<1x128xf32, #tpu.memory_space<vmem>>, vector<1x128xf32>,
    return
  }
  func.func @transform_0(%arg0: i32) -> (i32, i32) {
    %c0_i32 = arith.constant 0 : i32
    %c0_i32_0 = arith.constant 0 : i32
    return %c0_i32, %arg0 : i32, i32
  }
  func.func @transform_1(%arg0: i32) -> (i32, i32) {
    %c0_i32 = arith.constant 0 : i32
    %c0_i32_0 = arith.constant 0 : i32
    %c0_i32_1 = arith.constant 0 : i32
    return %c0_i32, %c0_i32_0 : i32, i32
  }
  func.func @transform_2(%arg0: i32) -> i32 {
    %c0_i32 = arith.constant 0 : i32
    %c0_i32_0 = arith.constant 0 : i32
    return %c0_i32 : i32
  }
  func.func @transform_3(%arg0: i32) -> (i32, i32) {
    %c0_i32 = arith.constant 0 : i32
    %c0_i32_0 = arith.constant 0 : i32
    return %c0_i32, %arg0 : i32, i32
  }
}

</mosaic_0001>

<bundles_post_ra>
// kernel: tpu_custom_call.1
= control target key start
LH: loop header
LB: loop body
LE: loop exit
PB: predicated region body
PF: predicated region fallthrough
CT: control target
= control target key end

     0   :  { %v82_v1 = vmov 0   ;;  %s122_s0 = inlined_call_operand.vmem [shape: f32[16,128], index: 0, kind: input, shape index: {}]   ;;  %s123_s1 = inlined_call_operand.vmem [shape: f32[16,1], index: 1, kind: input, shape index: {}]   ;;  %s124_s2 = inlined_call_operand.<no memory space> [shape: f32[1], index: 2, kind: input, shape index: {}]   ;;  %s125_s3 = inlined_call_operand.hbm [shape: f32[1,128], index: 3, kind: output, shape index: {}]  }
   0x1   :  { %v18_v0 = vld [vmem:[%s123_s1] sm:$0xff]  ;;  %59 = vset.pattern.permute.xlu0 %v82_v1 }
   0x2   :  { %9 = vsyncpa [#allocation4], 0  ;;  %22 = vperm.xlu0 %59, %v18_v0   ;;  %v19_v2 = vld [vmem:[%s123_s1 + $0x8] sm:$0xff]  ;;  %v16_v4 = vld [vmem:[%s122_s0] sm:$0xff]  ;;  %v40_v15 = vstv %s124_s2  ;;  %s83_s21 = smov [#allocation3]  }
   0x3   :  { %v17_v5 = vld [vmem:[%s122_s0 + $0x8] sm:$0xff]  ;;  %s49_s22 = sshll.u32 %s83_s21, 4  ;;  %s50_s22 = int_to_ptr.vmem [resolvable:$true] %s49_s22 }
   0x4   :  { %s60_s0 = scalar_lea.vmem %s50_s22, 16  ;;  %s64_s23 = scalar_lea.vmem %s50_s22, 32 }
   0x5   :  { %p61_p0 = scmp.ne.s32.totalorder %s50_s22, %s60_s0  ;;  %p65_p1 = scmp.lt.s32.totalorder %s50_s22, %s50_s22 }
   0x6   :  { %27 = vperm.xlu0 %59, %v19_v2   ;;  %p66_p2 = scmp.lt.s32.totalorder %s64_s23, %s60_s0 }
   0x8   :  { %p67_p3 = por %p66_p2, %p65_p1 }
   0xa   :  { %p68_p4 = pnand %p67_p3, %p61_p0 }
  0x7d   :  { %v23_v3 = vpop.permute.xlu0 %22 }
  0x7e   :  { %v30_v7 = vmul.f32 %v23_v3, %v16_v4 }
  0x81   :  { %v28_v6 = vpop.permute.xlu0 %27 }
  0x82   :  { %v31_v8 = vmul.f32 %v28_v6, %v17_v5 }
  0x84   :  { %v32_v9 = vadd.f32 %v31_v8, %v30_v7 }
  0x86   :  { %v33_v10 = vrot.slane %v32_v9, 4 }
  0x88   :  { %v34_v11 = vadd.f32 %v33_v10, %v32_v9 }
  0x8a   :  { %v35_v12 = vrot.slane %v34_v11, 2 }
  0x8c   :  { %v36_v13 = vadd.f32 %v35_v12, %v34_v11 }
  0x8e   :  { %v37_v14 = vrot.slane %v36_v13, 1 }
  0x90   :  { %v38_v16 = vadd.f32 %v37_v14, %v36_v13 }
  0x92   :  { %v41_v17 = vadd.f32 %v40_v15, %v38_v16 }
  0x94   :  { %42 = vst [vmem:[#allocation3] sm:$0x1] %v41_v17 }
  0x95   :  { %71 = shalt.err (!%p68_p4)
}
  0x96   :  { %52 = dma.vmem_to_hbm [thread:$0]  %s50_s22, 16, %s125_s3, [#allocation4]  }
  0x97   :  { %80 = dma.done.wait [#allocation4], 16  }
  0x98   :  { %81 = vsyncadd [#allocation4], 4294967280 }
  0x99   :  { %56 = vsyncpa [#allocation4], 1 }

</bundles_post_ra>
